<compile_context>
chip_gen: v6e
topology: v6e:2x2x1
jax: 0.10.0
libtpu: 0.0.40
codegen_flags: <defaults>
</compile_context>

<pallas_src>
import functools

import jax
import jax.numpy as jnp
from jax import lax
from jax.experimental import pallas as pl
from jax.experimental.pallas import tpu as pltpu

_EPS = 1e-5
_LANE = 128


def _round_up(x, m):
    return (x + m - 1) // m * m


def _pick_divisor_tile(total, target, quantum):
    """Largest multiple of `quantum` <= target that divides `total`."""
    best = quantum
    t = quantum
    while t <= min(total, target):
        if total % t == 0:
            best = t
        t += quantum
    return best


@functools.lru_cache(maxsize=1)
def _vmem_budgets():
    """(tile_budget_bytes, vmem_limit_bytes), generation-aware.

    v7x has only 64 MiB physical VMEM per TC; v5e/v6e have 128 MiB, where we
    spend more on bigger row tiles to cut HBM weight re-reads.
    """
    cap = 64 * 1024 * 1024                      # conservative default (v7x)
    try:
        cap = int(pltpu.get_tpu_info().vmem_capacity_bytes)
    except Exception:
        pass
    vmem_limit = min(int(cap * 0.80), 100 * 1024 * 1024)
    tile_budget = int(vmem_limit * 0.80)        # headroom for compiler scratch
    return tile_budget, vmem_limit


def _choose_matmul_tiles(M, K, N, out_bytes, has_residual, budget):
    """Pick the largest row tile (priority) and K tile fitting the budget."""
    tm_cap = max(16, _round_up(M, 16))
    for tm in (1024, 768, 512, 384, 256, 128, 64, 32, 16):
        tm_e = min(tm, tm_cap)
        for tk_target in (1024, 512, 256, 128):
            tk = _pick_divisor_tile(K, tk_target, _LANE)
            fp = (2 * tm_e * tk * 2            # x block, bf16, double-buffered
                  + 2 * tk * N * 2             # w block, bf16, double-buffered
                  + 2 * tm_e * N * out_bytes   # out block, double-buffered
                  + tm_e * N * 4               # f32 accumulator scratch
                  + (2 * tm_e * N * 2 if has_residual else 0)
                  + 4 * N * 4)                 # bias
            if fp <= budget:
                return tm_e, tk
    return min(128, tm_cap), _pick_divisor_tile(K, 128, _LANE)


# ----------------------------------------------------------------------------
# Kernel 1: K-tiled fused matmul  out = relu(x @ w' + bias [+ residual])
#   (BN scale is pre-folded into w'; projection shortcut is pre-merged along K)
# ----------------------------------------------------------------------------
def _fused_matmul_kernel(*refs, has_residual, relu):
    if has_residual:
        x_ref, w_ref, b_ref, r_ref, o_ref, acc_ref = refs
    else:
        x_ref, w_ref, b_ref, o_ref, acc_ref = refs

    k = pl.program_id(1)
    prod = jnp.dot(x_ref[...], w_ref[...], preferred_element_type=jnp.float32)

    @pl.when(k == 0)
    def _init():                      # first K step writes straight into acc
        acc_ref[...] = prod

    @pl.when(k > 0)
    def _accum():
        acc_ref[...] += prod

    @pl.when(k == pl.num_programs(1) - 1)
    def _finalize():
        out = acc_ref[...] + b_ref[...]
        if has_residual:
            out = out + r_ref[...].astype(jnp.float32)
        if relu:
            out = jnp.maximum(out, 0.0)
        o_ref[...] = out.astype(o_ref.dtype)


def fused_matmul_bias(x2d, w, bias, *, residual=None, relu=True,
                      out_dtype=jnp.bfloat16):
    """x2d:(M,K) bf16; w:(K,N) bf16 (BN scale folded); bias:(N,) f32.

    residual: optional (M,N) bf16 tensor added before ReLU.
    """
    M, K = x2d.shape
    N = w.shape[1]
    assert K % _LANE == 0 and N % _LANE == 0
    assert bias.shape[0] == N

    budget, vmem_limit = _vmem_budgets()
    out_bytes = jnp.dtype(out_dtype).itemsize
    tm, tk = _choose_matmul_tiles(M, K, N, out_bytes, residual is not None,
                                  budget)
    grid = (pl.cdiv(M, tm), K // tk)

    # TODO(synk): grid-invariant bias/residual blocks could use
    #             pipeline_mode=pl.Buffered(1) to save a buffer on v7x.
    in_specs = [
        pl.BlockSpec((tm, tk), lambda i, k: (i, k)),   # activations
        pl.BlockSpec((tk, N), lambda i, k: (k, 0)),    # weights (scale folded)
        pl.BlockSpec((1, N), lambda i, k: (0, 0)),     # folded BN bias
    ]
    inputs = [x2d, w, bias.reshape(1, N).astype(jnp.float32)]
    if residual is not None:
        in_specs.append(pl.BlockSpec((tm, N), lambda i, k: (i, 0)))
        inputs.append(residual)

    return pl.pallas_call(
        functools.partial(_fused_matmul_kernel,
                          has_residual=residual is not None, relu=relu),
        out_shape=jax.ShapeDtypeStruct((M, N), out_dtype),
        grid=grid,
        in_specs=in_specs,
        out_specs=pl.BlockSpec((tm, N), lambda i, k: (i, 0)),
        scratch_shapes=[pltpu.VMEM((tm, N), jnp.float32)],
        compiler_params=pltpu.CompilerParams(
            dimension_semantics=("parallel", "arbitrary"),
            vmem_limit_bytes=vmem_limit),
    )(*inputs)


# ----------------------------------------------------------------------------
# Kernel 2: 3x3 conv + folded BN bias + ReLU.
#   stride 1: halo tile, kw taps pre-concatenated once -> 3 matmuls of K=3C
#   stride 2: 4-phase decomposition (done in the wrapper) -> same kernel,
#             taps select a phase channel range (no 9x HBM im2col)
# ----------------------------------------------------------------------------
def _conv3x3_kernel(x_ref, w_ref, b_ref, o_ref, *, ho, wo, c,
                    plane_defs, groups):
    # plane_defs: tuple of tap lists; each tap list holds 3 (dw, chan_offset)
    #             pairs that form one kw-concatenated "wide" plane, built once
    #             per sample and reused by every kh that needs it.
    # groups:     3 entries (dh, plane_idx); group g multiplies weight
    #             w_ref[g] of shape (3C, C) (kw taps concatenated along K).
    wides = []
    for taps in plane_defs:
        wides.append(jnp.concatenate(
            [x_ref[0, :, dw:dw + wo, co:co + c] for (dw, co) in taps],
            axis=-1))                                  # (hp, wo, 3C)
    acc = None
    for g, (dh, p_idx) in enumerate(groups):
        patch = wides[p_idx][dh:dh + ho].reshape(ho * wo, 3 * c)
        contrib = jnp.dot(patch, w_ref[g], preferred_element_type=jnp.float32)
        acc = contrib if acc is None else acc + contrib
    out = jnp.maximum(acc + b_ref[...], 0.0)
    o_ref[...] = out.astype(o_ref.dtype).reshape(1, ho * wo, c)


def conv3x3_bn_relu(x_nhwc, w_hwio, bias, *, stride, out_dtype=jnp.bfloat16):
    """x_nhwc:(N,H,W,C) bf16 (C multiple of 128, zero-padded channels);
    w_hwio:(3,3,C,C) f32 with BN scale folded; bias:(C,) f32 folded."""
    n, h, w, c = x_nhwc.shape
    assert c % _LANE == 0
    ho = (h + 2 - 3) // stride + 1
    wo = (w + 2 - 3) // stride + 1

    if stride == 1:
        x_in = jnp.pad(x_nhwc, ((0, 0), (1, 1), (1, 1), (0, 0)))
        hp, wp_eff, pc = h + 2, w + 2, c
        plane_defs = (((0, 0), (1, 0), (2, 0)),)        # kw = 0, 1, 2
        groups = ((0, 0), (1, 0), (2, 0))               # kh = 0, 1, 2
    elif stride == 2:
        # x_pad[2i+kh, 2j+kw] lives in phase plane (kh%2, kw%2) at (i+kh//2,
        # j+kw//2).  Stack the 4 phases along channels (no 9x expansion).
        hp_pad = _round_up(h + 2, 2)
        wp_pad = _round_up(w + 2, 2)
        x_pad = jnp.pad(x_nhwc, ((0, 0), (1, hp_pad - h - 1),
                                 (1, wp_pad - w - 1), (0, 0)))
        phases = [x_pad[:, ph::2, pw::2, :]
                  for ph in range(2) for pw in range(2)]
        x_in = jnp.concatenate(phases, axis=-1)         # (N, hp/2, wp/2, 4C)
        hp, wp_eff, pc = hp_pad // 2, wp_pad // 2, 4 * c

        def _taps(row_parity):
            return ((0, (2 * row_parity + 0) * c),      # kw = 0
                    (0, (2 * row_parity + 1) * c),      # kw = 1
                    (1, (2 * row_parity + 0) * c))      # kw = 2
        plane_defs = (_taps(0), _taps(1))
        groups = ((0, 0), (0, 1), (1, 0))               # kh = 0, 1, 2
    else:
        raise NotImplementedError("stride must be 1 or 2")

    # Weight group g = kh: kw taps concatenated along K -> (3C, C).
    w_g = jnp.stack([
        jnp.concatenate([w_hwio[kh, kw] for kw in range(3)], axis=0)
        for kh in range(3)]).astype(jnp.bfloat16)

    _, vmem_limit = _vmem_budgets()
    # TODO(synk): tile H (with a 1-row halo) into the grid so v7x's two
    #             TensorCores stay busy when batch is small.
    out = pl.pallas_call(
        functools.partial(_conv3x3_kernel, ho=ho, wo=wo, c=c,
                          plane_defs=plane_defs, groups=groups),
        out_shape=jax.ShapeDtypeStruct((n, ho * wo, c), out_dtype),
        grid=(n,),
        in_specs=[
            pl.BlockSpec((1, hp, wp_eff, pc), lambda i: (i, 0, 0, 0)),
            pl.BlockSpec((3, 3 * c, c), lambda i: (0, 0, 0)),
            pl.BlockSpec((1, c), lambda i: (0, 0)),
        ],
        out_specs=pl.BlockSpec((1, ho * wo, c), lambda i: (i, 0, 0)),
        compiler_params=pltpu.CompilerParams(
            dimension_semantics=("parallel",),
            vmem_limit_bytes=vmem_limit),
    )(x_in, w_g, bias.reshape(1, c).astype(jnp.float32))
    return out.reshape(n * ho * wo, c)


# ----------------------------------------------------------------------------
# JAX glue: padding & BN folding (scale folded into weights, in f32)
# ----------------------------------------------------------------------------
def _pad_last(a, target):
    pad = [(0, 0)] * (a.ndim - 1) + [(0, target - a.shape[-1])]
    return jnp.pad(a, pad)


def _pad2d(a, rows, cols):
    return jnp.pad(a, ((0, rows - a.shape[0]), (0, cols - a.shape[1])))


def _pad1d(v, target):
    return jnp.pad(v, (0, target - v.shape[0]))


def _bn_fold(bn, conv_bias):
    g, beta, mean, var = bn
    scale = g / jnp.sqrt(var + _EPS)
    bias = (conv_bias - mean) * scale + beta
    return scale, bias


def make_params(key, in_channels, out_channels):
    mid = out_channels // 4
    ks = jax.random.split(key, 12)

    def w(k, shape, fan_in):
        return jax.random.normal(k, shape, jnp.float32) / jnp.sqrt(fan_in)

    def bn_params(kk, c):
        k1, k2, k3, k4 = jax.random.split(kk, 4)
        return (1.0 + 0.1 * jax.random.normal(k1, (c,), jnp.float32),   # gamma
                0.1 * jax.random.normal(k2, (c,), jnp.float32),         # beta
                0.1 * jax.random.normal(k3, (c,), jnp.float32),         # mean
                0.5 + jnp.abs(jax.random.normal(k4, (c,), jnp.float32)))  # var

    p = {}
    p["conv1_w"] = w(ks[0], (1, 1, in_channels, mid), in_channels)        # HWIO
    p["conv1_b"] = 0.1 * jax.random.normal(ks[1], (mid,), jnp.float32)
    p["conv2_w"] = w(ks[2], (3, 3, mid, mid), 9 * mid)
    p["conv2_b"] = 0.1 * jax.random.normal(ks[3], (mid,), jnp.float32)
    p["conv3_w"] = w(ks[4], (1, 1, mid, out_channels), mid)
    p["conv3_b"] = 0.1 * jax.random.normal(ks[5], (out_channels,), jnp.float32)
    p["plus_w"] = w(ks[6], (1, 1, in_channels, out_channels), in_channels)
    p["plus_b"] = 0.1 * jax.random.normal(ks[7], (out_channels,), jnp.float32)
    p["bn1"] = bn_params(ks[8], mid)
    p["bn2"] = bn_params(ks[9], mid)
    p["bn3"] = bn_params(ks[10], out_channels)
    p["norm"] = bn_params(ks[11], out_channels)
    return p


# ----------------------------------------------------------------------------
# Residual_Block forward (Pallas path)
# ----------------------------------------------------------------------------
def residual_block_forward(x_nchw, p, stride=1, conv_flag=False):
    x = jnp.transpose(x_nchw, (0, 2, 3, 1)).astype(jnp.float32)   # NHWC
    n, h, w, cin = x.shape
    mid = p["conv1_w"].shape[-1]
    cout = p["conv3_w"].shape[-1]
    if not conv_flag:
        assert stride == 1 and cin == cout, \
            "identity shortcut requires stride==1 and in_channels==out_channels"

    cin_p = _round_up(cin, _LANE)
    mid_p = _round_up(mid, _LANE)
    cout_p = _round_up(cout, _LANE)

    x_p = _pad_last(x, cin_p).astype(jnp.bfloat16)                # lane-dense

    # conv1 (1x1) + bn1 + relu ; BN scale folded into the weight (in f32)
    s1, b1 = _bn_fold(p["bn1"], p["conv1_b"])
    w1 = _pad2d(p["conv1_w"].reshape(cin, mid) * s1[None, :],
                cin_p, mid_p).astype(jnp.bfloat16)
    y = fused_matmul_bias(x_p.reshape(n * h * w, cin_p), w1,
                          _pad1d(b1, mid_p), relu=True,
                          out_dtype=jnp.bfloat16)

    # conv2 (3x3, stride, pad=1) + bn2 + relu ; BN scale folded into weight
    s2, b2 = _bn_fold(p["bn2"], p["conv2_b"])
    w2 = jnp.pad(p["conv2_w"] * s2[None, None, None, :],
                 ((0, 0), (0, 0), (0, mid_p - mid), (0, mid_p - mid)))
    y2 = conv3x3_bn_relu(y.reshape(n, h, w, mid_p), w2, _pad1d(b2, mid_p),
                         stride=stride, out_dtype=jnp.bfloat16)
    ho = (h + 2 - 3) // stride + 1
    wo = (w + 2 - 3) // stride + 1

    # conv3 (1x1) + bn3 + shortcut + relu, fused into one K-tiled matmul
    s3, b3 = _bn_fold(p["bn3"], p["conv3_b"])
    w3 = _pad2d(p["conv3_w"].reshape(mid, cout) * s3[None, :], mid_p, cout_p)
    if conv_flag:
        # Projection shortcut merged along K: [y2 | xs] @ [[w3'];[wp']] + bias
        ss, bs = _bn_fold(p["norm"], p["plus_b"])
        wp_ = _pad2d(p["plus_w"].reshape(cin, cout) * ss[None, :],
                     cin_p, cout_p)
        xs = x_p[:, ::stride, ::stride, :].reshape(n * ho * wo, cin_p)
        x_cat = jnp.concatenate([y2, xs], axis=1)
        w_cat = jnp.concatenate([w3, wp_], axis=0).astype(jnp.bfloat16)
        out2d = fused_matmul_bias(
            x_cat, w_cat, _pad1d(b3, cout_p) + _pad1d(bs, cout_p),
            relu=True, out_dtype=jnp.bfloat16)
    else:
        res = x_p.reshape(n * h * w, cin_p)            # cin_p == cout_p here
        out2d = fused_matmul_bias(y2, w3.astype(jnp.bfloat16),
                                  _pad1d(b3, cout_p), residual=res,
                                  relu=True, out_dtype=jnp.bfloat16)

    # Slice + NHWC->NCHW transpose on bf16; cast up only at the very end.
    out = out2d.reshape(n, ho, wo, cout_p)[..., :cout]
    out = jnp.transpose(out, (0, 3, 1, 2))             # NCHW, bf16
    return out.astype(jnp.float32)


# ----------------------------------------------------------------------------
# Pure-JAX f32 reference (eval-mode BN) for correctness checking
# ----------------------------------------------------------------------------
def residual_block_reference(x_nchw, p, stride=1, conv_flag=False):
    x = jnp.transpose(x_nchw, (0, 2, 3, 1)).astype(jnp.float32)

    def conv(z, w4, b, s=1, pad=0):
        y = lax.conv_general_dilated(
            z, w4, (s, s), [(pad, pad), (pad, pad)],
            dimension_numbers=("NHWC", "HWIO", "NHWC"))
        return y + b

    def bn(z, params):
        g, beta, m, v = params
        return (z - m) / jnp.sqrt(v + _EPS) * g + beta

    y = jax.nn.relu(bn(conv(x, p["conv1_w"], p["conv1_b"]), p["bn1"]))
    y = jax.nn.relu(bn(conv(y, p["conv2_w"], p["conv2_b"], s=stride, pad=1),
                       p["bn2"]))
    y = bn(conv(y, p["conv3_w"], p["conv3_b"]), p["bn3"])
    if conv_flag:
        x_plus = bn(conv(x, p["plus_w"], p["plus_b"], s=stride), p["norm"])
    else:
        x_plus = x
    return jnp.transpose(jax.nn.relu(y + x_plus), (0, 3, 1, 2))


def _check(out, ref, name):
    err = float(jnp.max(jnp.abs(out - ref)))
    scale = float(jnp.max(jnp.abs(ref)))
    # bf16 activations / BN-folded bf16 weights vs f32 reference.
    assert err <= 0.05 * scale + 0.02, f"{name}: err={err:.4f} scale={scale:.4f}"


if __name__ == "__main__":
    key = jax.random.PRNGKey(0)
    k_x1, k_x2, k_p1, k_p2 = jax.random.split(key, 4)

    # Case 1: projection shortcut (conv_flag=True), stride 2, Cin=8 -> Cout=16
    x1 = jax.random.normal(k_x1, (2, 8, 8, 8), jnp.float32)          # NCHW
    p1 = make_params(k_p1, in_channels=8, out_channels=16)
    out1 = jax.block_until_ready(
        residual_block_forward(x1, p1, stride=2, conv_flag=True))
    ref1 = residual_block_reference(x1, p1, stride=2, conv_flag=True)
    assert out1.shape == (2, 16, 4, 4), out1.shape
    _check(out1, ref1, "case1")

    # Case 2: identity shortcut (conv_flag=False), stride 1, Cin=Cout=16
    x2 = jax.random.normal(k_x2, (2, 16, 8, 8), jnp.float32)         # NCHW
    p2 = make_params(k_p2, in_channels=16, out_channels=16)
    out2 = jax.block_until_ready(
        residual_block_forward(x2, p2, stride=1, conv_flag=False))
    ref2 = residual_block_reference(x2, p2, stride=1, conv_flag=False)
    assert out2.shape == (2, 16, 8, 8), out2.shape
    _check(out2, ref2, "case2")

    print("KERNEL_OK")
</pallas_src>

<mosaic_0001>
module attributes {stable_mosaic.version = 11 : i64} {
  func.func @_fused_matmul_kernel(%arg0: i32, %arg1: i32, %arg2: memref<128x128xbf16, #tpu.memory_space<vmem>>, %arg3: memref<128x128xbf16, #tpu.memory_space<vmem>>, %arg4: memref<1x128xf32, #tpu.memory_space<vmem>>, %arg5: memref<128x128xbf16, #tpu.memory_space<vmem>>, %arg6: memref<128x128xf32, #tpu.memory_space<vmem>>) attributes {dimension_semantics = [#tpu.dimension_semantics<parallel>, #tpu.dimension_semantics<arbitrary>], iteration_bounds = array<i64: 1, 1>, scalar_prefetch = 0 : i64, scratch_operands = 1 : i64, tpu.core_type = #tpu.core_type<tc>, window_params = [{transform_indices = @transform_0, window_bounds = array<i64: 128, 128>}, {transform_indices = @transform_1, window_bounds = array<i64: 128, 128>}, {pipeline_mode = #tpu.pipeline_mode<synchronous>, transform_indices = @transform_2, window_bounds = array<i64: 1, 128>}, {transform_indices = @transform_3, window_bounds = array<i64: 128, 128>}]} {
    %c0 = arith.constant 0 : index
    %c0_0 = arith.constant 0 : index
    %0 = vector.load %arg2[%c0, %c0_0] : memref<128x128xbf16, #tpu.memory_space<vmem>>, vector<128x128xbf16>
    %c0_1 = arith.constant 0 : index
    %c0_2 = arith.constant 0 : index
    %1 = vector.load %arg3[%c0_1, %c0_2] : memref<128x128xbf16, #tpu.memory_space<vmem>>, vector<128x128xbf16>
    %cst = arith.constant dense<0.000000e+00> : vector<128x128xf32>
    %2 = tpu.matmul %0, %1, %cst {dimension_numbers = #tpu.dot_dimension_numbers<[1], [0], [0], [1], [0, 0, 1, 1], [], []>} : vector<128x128xbf16>, vector<128x128xbf16>, vector<128x128xf32> -> vector<128x128xf32>
    %c0_i32 = arith.constant 0 : i32
    %3 = arith.cmpi eq, %arg1, %c0_i32 : i32
    %4 = arith.extui %3 : i1 to i32
    %c0_i32_3 = arith.constant 0 : i32
    %5 = arith.cmpi ne, %4, %c0_i32_3 : i32
    scf.if %5 {
      %c0_8 = arith.constant 0 : index
      %c0_9 = arith.constant 0 : index
      %12 = vector.load %arg6[%c0_8, %c0_9] : memref<128x128xf32, #tpu.memory_space<vmem>>, vector<128x128xf32>
      tpu.vector_store %arg6[%c0_8, %c0_9], %2 {strides = array<i32>} : memref<128x128xf32, #tpu.memory_space<vmem>>, vector<128x128xf32>,
    } else {
    }
    %c0_i32_4 = arith.constant 0 : i32
    %6 = arith.cmpi sgt, %arg1, %c0_i32_4 : i32
    %7 = arith.extui %6 : i1 to i32
    %c0_i32_5 = arith.constant 0 : i32
    %8 = arith.cmpi ne, %7, %c0_i32_5 : i32
    scf.if %8 {
      %c0_8 = arith.constant 0 : index
      %c0_9 = arith.constant 0 : index
      %12 = vector.load %arg6[%c0_8, %c0_9] : memref<128x128xf32, #tpu.memory_space<vmem>>, vector<128x128xf32>
      %13 = arith.addf %12, %2 : vector<128x128xf32>
      %c0_10 = arith.constant 0 : index
      %c0_11 = arith.constant 0 : index
      %14 = vector.load %arg6[%c0_10, %c0_11] : memref<128x128xf32, #tpu.memory_space<vmem>>, vector<128x128xf32>
      tpu.vector_store %arg6[%c0_10, %c0_11], %13 {strides = array<i32>} : memref<128x128xf32, #tpu.memory_space<vmem>>, vector<128x128xf32>,
    } else {
    }
    %c0_i32_6 = arith.constant 0 : i32
    %9 = arith.cmpi eq, %arg1, %c0_i32_6 : i32
    %10 = arith.extui %9 : i1 to i32
    %c0_i32_7 = arith.constant 0 : i32
    %11 = arith.cmpi ne, %10, %c0_i32_7 : i32
    scf.if %11 {
      %c0_8 = arith.constant 0 : index
      %c0_9 = arith.constant 0 : index
      %12 = vector.load %arg6[%c0_8, %c0_9] : memref<128x128xf32, #tpu.memory_space<vmem>>, vector<128x128xf32>
      %c0_10 = arith.constant 0 : index
      %c0_11 = arith.constant 0 : index
      %13 = vector.load %arg4[%c0_10, %c0_11] : memref<1x128xf32, #tpu.memory_space<vmem>>, vector<1x128xf32>
      %14 = vector.broadcast %13 : vector<1x128xf32> to vector<128x128xf32>
      %15 = arith.addf %12, %14 : vector<128x128xf32>
      %cst_12 = arith.constant 0.000000e+00 : f32
      %16 = vector.broadcast %cst_12 : f32 to vector<128x128xf32>
      %17 = arith.maximumf %15, %16 : vector<128x128xf32>
      %18 = arith.truncf %17 : vector<128x128xf32> to vector<128x128xbf16>
      %c0_13 = arith.constant 0 : index
      %c0_14 = arith.constant 0 : index
      %19 = vector.load %arg5[%c0_13, %c0_14] : memref<128x128xbf16, #tpu.memory_space<vmem>>, vector<128x128xbf16>
      tpu.vector_store %arg5[%c0_13, %c0_14], %18 {strides = array<i32>} : memref<128x128xbf16, #tpu.memory_space<vmem>>, vector<128x128xbf16>,
    } else {
    }
    return
  }
  func.func @transform_0(%arg0: i32, %arg1: i32) -> (i32, i32) {
    %c0_i32 = arith.constant 0 : i32
    return %arg0, %arg1 : i32, i32
  }
  func.func @transform_1(%arg0: i32, %arg1: i32) -> (i32, i32) {
    %c0_i32 = arith.constant 0 : i32
    %c0_i32_0 = arith.constant 0 : i32
    return %arg1, %c0_i32 : i32, i32
  }
  func.func @transform_2(%arg0: i32, %arg1: i32) -> (i32, i32) {
    %c0_i32 = arith.constant 0 : i32
    %c0_i32_0 = arith.constant 0 : i32
    %c0_i32_1 = arith.constant 0 : i32
    return %c0_i32, %c0_i32_0 : i32, i32
  }
  func.func @transform_3(%arg0: i32, %arg1: i32) -> (i32, i32) {
    %c0_i32 = arith.constant 0 : i32
    %c0_i32_0 = arith.constant 0 : i32
    return %arg0, %c0_i32 : i32, i32
  }
}

</mosaic_0001>

<bundles_post_ra>
// kernel: tpu_custom_call.1
= control target key start
LH: loop header
LB: loop body
LE: loop exit
PB: predicated region body
PF: predicated region fallthrough
CT: control target
= control target key end

     0   :  { %8 = vsyncpa [#allocation4], 0  ;;  %s790_s0 = inlined_call_operand.hbm [shape: bf16[128,128], index: 0, kind: input, shape index: {}]   ;;  %s791_s1 = inlined_call_operand.hbm [shape: bf16[128,128], index: 1, kind: input, shape index: {}]   ;;  %s792_s2 = inlined_call_operand.vmem [shape: f32[1,128], index: 2, kind: input, shape index: {}]   ;;  %s793_s3 = inlined_call_operand.hbm [shape: bf16[128,128], index: 3, kind: output, shape index: {}]  }
   0x1   :  { %9 = vsyncpa [#allocation7], 0 }
   0x2   :  { %10 = vsyncpa [#allocation5], 0  ;;  %s744_s12 = smov [#allocation3]  }
   0x3   :  { %s16_s13 = sshll.u32 %s744_s12, 4  ;;  %s17_s13 = int_to_ptr.vmem [resolvable:$true] %s16_s13 }
   0x4   :  { %s686_s14 = scalar_lea.vmem %s17_s13, 1024  ;;  %p691_p1 = scmp.lt.s32.totalorder %s17_s13, %s17_s13 }
   0x5   :  { %p687_p0 = scmp.ne.s32.totalorder %s17_s13, %s686_s14  ;;  %p692_p2 = scmp.lt.s32.totalorder %s686_s14, %s686_s14 }
   0x7   :  { %p693_p3 = por %p692_p2, %p691_p1 }
   0x9   :  { %p694_p4 = pnand %p693_p3, %p687_p0 }
   0xb   :  { %697 = shalt.err (!%p694_p4)
}
   0xc   :  { %s745_s15 = smov 64   ;;  %s746_s16 = smov 4  }
   0xd   :  { %22 = dma.hbm_to_vmem [thread:$0]  %s790_s0, 1024, %s17_s13, [#allocation4], %s745_s15, %s745_s15, %s746_s16  }
   0xe   :  { %s747_s19 = smov [#allocation6]  }
   0xf   :  { %s28_s20 = sshll.u32 %s747_s19, 4  ;;  %s29_s20 = int_to_ptr.vmem [resolvable:$true] %s28_s20 }
  0x10   :  { %s706_s21 = scalar_lea.vmem %s29_s20, 1024  ;;  %p711_p6 = scmp.lt.s32.totalorder %s29_s20, %s29_s20 }
  0x11   :  { %p707_p5 = scmp.ne.s32.totalorder %s29_s20, %s706_s21  ;;  %p712_p7 = scmp.lt.s32.totalorder %s706_s21, %s706_s21 }
  0x13   :  { %p713_p8 = por %p712_p7, %p711_p6 }
  0x15   :  { %p714_p9 = pnand %p713_p8, %p707_p5 }
  0x17   :  { %717 = shalt.err (!%p714_p9)
}
  0x18   :  { %34 = dma.hbm_to_vmem [thread:$0]  %s791_s1, 1024, %s29_s20, [#allocation7], %s745_s15, %s745_s15, %s746_s16  }
  0x19   :  { %738 = dma.done.wait [#allocation4], 1024  }
  0x1a   :  { %739 = vsyncadd [#allocation4], 4294966272 }
  0x1b   :  { %740 = dma.done.wait [#allocation7], 1024  }
  0x1c   :  { %741 = vsyncadd [#allocation7], 4294966272  ;;  %v662_v0 = vld [vmem:[#allocation6 + $0x38] sm:$0xff]   ;;  %v663_v1 = vld [vmem:[#allocation6 + $0x30] sm:$0xff]  }
  0x1d   :  { %609 = vmatprep.subr.bf16.mxu0 %v662_v0  ;;  %641 = vmatprep.subr.bf16.mxu1 %v662_v0  ;;  %v664_v2 = vld [vmem:[#allocation6 + $0x28] sm:$0xff]   ;;  %v665_v3 = vld [vmem:[#allocation6 + $0x20] sm:$0xff]   ;;  %v666_v6 = vld [vmem:[#allocation6 + $0x18] sm:$0xff]  }
  0x1e   :  { %610 = vmatpush3.bf16.msra.mxu0 %v662_v0  ;;  %649 = vmatpush3.bf16.msra.mxu1 %v662_v0  ;;  %v670_v4 = vld [vmem:[#allocation3] sm:$0xff]   ;;  %v667_v7 = vld [vmem:[#allocation6 + $0x10] sm:$0xff]   ;;  %v668_v8 = vld [vmem:[#allocation6 + $0x8] sm:$0xff]  }
  0x1f   :  { %611 = vmatprep.subr.bf16.mxu0 %v663_v1  ;;  %642 = vmatprep.subr.bf16.mxu1 %v663_v1  ;;  %v671_v5 = vld [vmem:[#allocation3 + $0x20] sm:$0xff]   ;;  %v672_v10 = vld [vmem:[#allocation3 + $0x8] sm:$0xff]   ;;  %v674_v12 = vld [vmem:[#allocation3 + $0x10] sm:$0xff]  }
  0x20   :  { %625 = vmatprep.mubr.bf16.mxu0 %v670_v4  ;;  %633 = vmatprep.mubr.bf16.mxu1 %v671_v5  ;;  %v669_v9 = vld [vmem:[#allocation6] sm:$0xff]   ;;  %v673_v11 = vld [vmem:[#allocation3 + $0x28] sm:$0xff]   ;;  %v675_v13 = vld [vmem:[#allocation3 + $0x30] sm:$0xff]  }
  0x21   :  { %v676_v14 = vld [vmem:[#allocation3 + $0x18] sm:$0xff]   ;;  %v513_v16 = vld [vmem:[%s792_s2] ss:$0 sm:$0xff]  ;;  %s748_s2 = smov [#allocation8]  }
  0x22   :  { %612 = vmatpush3.bf16.msra.mxu0 %v663_v1  ;;  %650 = vmatpush3.bf16.msra.mxu1 %v663_v1  ;;  %v677_v15 = vld [vmem:[#allocation3 + $0x38] sm:$0xff]   ;;  %s484_s24 = sshll.u32 %s748_s2, 4  ;;  %s485_s24 = int_to_ptr.vmem [resolvable:$true] %s484_s24 }
  0x23   :  { %613 = vmatprep.subr.bf16.mxu0 %v664_v2  ;;  %643 = vmatprep.subr.bf16.mxu1 %v664_v2  ;;  %s718_s25 = scalar_lea.vmem %s485_s24, 1024  ;;  %p723_p11 = scmp.lt.s32.totalorder %s485_s24, %s485_s24 }
  0x24   :  { %p719_p10 = scmp.ne.s32.totalorder %s485_s24, %s718_s25  ;;  %p724_p12 = scmp.lt.s32.totalorder %s718_s25, %s718_s25 }
  0x26   :  { %614 = vmatpush3.bf16.msra.mxu0 %v664_v2  ;;  %651 = vmatpush3.bf16.msra.mxu1 %v664_v2  ;;  %p725_p13 = por %p724_p12, %p723_p11 }
  0x27   :  { %615 = vmatprep.subr.bf16.mxu0 %v665_v3  ;;  %644 = vmatprep.subr.bf16.mxu1 %v665_v3 }
  0x28   :  { %p726_p0 = pnand %p725_p13, %p719_p10 }
  0x2a   :  { %616 = vmatpush3.bf16.msra.mxu0 %v665_v3  ;;  %652 = vmatpush3.bf16.msra.mxu1 %v665_v3 }
  0x2b   :  { %617 = vmatprep.subr.bf16.mxu0 %v666_v6  ;;  %645 = vmatprep.subr.bf16.mxu1 %v666_v6 }
  0x2e   :  { %618 = vmatpush3.bf16.msra.mxu0 %v666_v6  ;;  %653 = vmatpush3.bf16.msra.mxu1 %v666_v6 }
  0x2f   :  { %619 = vmatprep.subr.bf16.mxu0 %v667_v7  ;;  %646 = vmatprep.subr.bf16.mxu1 %v667_v7 }
  0x32   :  { %620 = vmatpush3.bf16.msra.mxu0 %v667_v7  ;;  %654 = vmatpush3.bf16.msra.mxu1 %v667_v7 }
  0x33   :  { %621 = vmatprep.subr.bf16.mxu0 %v668_v8  ;;  %647 = vmatprep.subr.bf16.mxu1 %v668_v8 }
  0x36   :  { %622 = vmatpush3.bf16.msra.mxu0 %v668_v8  ;;  %655 = vmatpush3.bf16.msra.mxu1 %v668_v8 }
  0x37   :  { %623 = vmatprep.subr.bf16.mxu0 %v669_v9  ;;  %648 = vmatprep.subr.bf16.mxu1 %v669_v9 }
  0x3a   :  { %624 = vmatpush3.bf16.msra.mxu0 %v669_v9  ;;  %656 = vmatpush3.bf16.msra.mxu1 %v669_v9 }
  0x3d   :  { %626 = vmatmul.mubr.bf16.vlgmr.msra.gmra.mxu0 %v672_v10  ;;  %634 = vmatmul.mubr.bf16.vlgmr.msra.gmra.mxu1 %v673_v11 }
  0x3e   :  { %629 = vmatprep.mubr.bf16.mxu0 %v674_v12  ;;  %637 = vmatprep.mubr.bf16.mxu1 %v675_v13 }
  0x45   :  { %630 = vmatmul.mubr.bf16.gmra.mxu0 %v676_v14  ;;  %638 = vmatmul.mubr.bf16.gmra.mxu1 %v677_v15 }
  0xfd   :  { %v627_v17 = vpop.f32.mrf.mxu0  ;;  %v635_v18 = vpop.f32.mrf.mxu1 }
  0xfe   :  { %v369_v19 = vadd.f32 %v627_v17, %v513_v16  ;;  %v377_v20 = vadd.f32 %v635_v18, %v513_v16 }
  0xff   :  { %v206_v21 = vpop.f32.mrf.mxu0  ;;  %v238_v22 = vpop.f32.mrf.mxu1 }
 0x100   :  { %v367_v23 = vadd.f32 %v513_v16, %v206_v21  ;;  %v375_v24 = vadd.f32 %v513_v16, %v238_v22  ;;  %v385_v29 = vmax.f32 %v369_v19, 0.0  ;;  %v393_v30 = vmax.f32 %v377_v20, 0.0 }
 0x101   :  { %v628_v25 = vpop.f32.mrf.mxu0  ;;  %v636_v26 = vpop.f32.mrf.mxu1 }
 0x102   :  { %v370_v27 = vadd.f32 %v628_v25, %v513_v16  ;;  %v378_v28 = vadd.f32 %v636_v26, %v513_v16  ;;  %v383_v37 = vmax.f32 %v367_v23, 0.0  ;;  %v391_v38 = vmax.f32 %v375_v24, 0.0 }
 0x103   :  { %v209_v31 = vpop.f32.mrf.mxu0  ;;  %v241_v32 = vpop.f32.mrf.mxu1 }
 0x104   :  { %v386_v33 = vmax.f32 %v370_v27, 0.0  ;;  %v394_v34 = vmax.f32 %v378_v28, 0.0  ;;  %v368_v35 = vadd.f32 %v513_v16, %v209_v31  ;;  %v376_v36 = vadd.f32 %v513_v16, %v241_v32 }
 0x105   :  { %v631_v39 = vpop.f32.mrf.mxu0  ;;  %v639_v40 = vpop.f32.mrf.mxu1 }
 0x106   :  { %v554_v41 = vpack.c.bf16 %v386_v33, %v385_v29  ;;  %v574_v42 = vpack.c.bf16 %v394_v34, %v393_v30  ;;  %v384_v43 = vmax.f32 %v368_v35, 0.0  ;;  %v392_v44 = vmax.f32 %v376_v36, 0.0 }
 0x107   :  { %v373_v45 = vadd.f32 %v631_v39, %v513_v16  ;;  %v381_v46 = vadd.f32 %v639_v40, %v513_v16  ;;  %v222_v47 = vpop.f32.mrf.mxu0  ;;  %v254_v48 = vpop.f32.mrf.mxu1 }
 0x108   :  { %586 = vst [vmem:[#allocation8 + $0x8] sm:$0xff] %v554_v41   ;;  %590 = vst [vmem:[#allocation8 + $0x28] sm:$0xff] %v574_v42   ;;  %v549_v49 = vpack.c.bf16 %v384_v43, %v383_v37  ;;  %v569_v50 = vpack.c.bf16 %v392_v44, %v391_v38  ;;  %v371_v51 = vadd.f32 %v513_v16, %v222_v47 }
 0x109   :  { %v379_v52 = vadd.f32 %v513_v16, %v254_v48  ;;  %v632_v53 = vpop.f32.mrf.mxu0  ;;  %v640_v54 = vpop.f32.mrf.mxu1  ;;  %v389_v57 = vmax.f32 %v373_v45, 0.0  ;;  %v397_v58 = vmax.f32 %v381_v46, 0.0 }
 0x10a   :  { %550 = vst [vmem:[#allocation8] sm:$0xff] %v549_v49   ;;  %589 = vst [vmem:[#allocation8 + $0x20] sm:$0xff] %v569_v50   ;;  %v374_v55 = vadd.f32 %v632_v53, %v513_v16  ;;  %v382_v56 = vadd.f32 %v640_v54, %v513_v16  ;;  %v387_v1 = vmax.f32 %v371_v51, 0.0 }
 0x10b   :  { %v225_v59 = vpop.f32.mrf.mxu0  ;;  %v257_v60 = vpop.f32.mrf.mxu1  ;;  %v395_v2 = vmax.f32 %v379_v52, 0.0 }
 0x10c   :  { %v390_v61 = vmax.f32 %v374_v55, 0.0  ;;  %v398_v62 = vmax.f32 %v382_v56, 0.0  ;;  %v372_v63 = vadd.f32 %v513_v16, %v225_v59  ;;  %v380_v0 = vadd.f32 %v513_v16, %v257_v60 }
 0x10e   :  { %v564_v3 = vpack.c.bf16 %v390_v61, %v389_v57  ;;  %v584_v4 = vpack.c.bf16 %v398_v62, %v397_v58  ;;  %v388_v5 = vmax.f32 %v372_v63, 0.0  ;;  %v396_v6 = vmax.f32 %v380_v0, 0.0 }
 0x110   :  { %588 = vst [vmem:[#allocation8 + $0x18] sm:$0xff] %v564_v3   ;;  %592 = vst [vmem:[#allocation8 + $0x38] sm:$0xff] %v584_v4   ;;  %v559_v7 = vpack.c.bf16 %v388_v5, %v387_v1  ;;  %v579_v8 = vpack.c.bf16 %v396_v6, %v395_v2 }
 0x112   :  { %587 = vst [vmem:[#allocation8 + $0x10] sm:$0xff] %v559_v7   ;;  %591 = vst [vmem:[#allocation8 + $0x30] sm:$0xff] %v579_v8  }
 0x113   :  { %729 = shalt.err (!%p726_p0)
}
 0x114   :  { %490 = dma.vmem_to_hbm [thread:$0]  %s485_s24, 1024, %s793_s3, [#allocation5], %s745_s15, %s745_s15, %s746_s16  }
 0x115   :  { %742 = dma.done.wait [#allocation5], 1024  }
 0x116   :  { %743 = vsyncadd [#allocation5], 4294966272 }
 0x117   :  { %494 = vsyncpa [#allocation4], 1 }
 0x118   :  { %495 = vsyncpa [#allocation7], 1 }
 0x119   :  { %496 = vsyncpa [#allocation5], 1 }

</bundles_post_ra>
